<compile_context>
chip_gen: v5e
topology: v5e:2x2
jax: 0.10.0
libtpu: 0.0.40
codegen_flags: <defaults>
</compile_context>

<pallas_src>
from typing import NamedTuple

import jax
import jax.numpy as jnp
from jax.experimental import pallas as pl
from jax.experimental.pallas import tpu as pltpu


_LANE = 128        # lane width: last-dim multiple for dense MXU / unmasked vst
_ROW_ALIGN = 16    # sublane-friendly batch-tile multiple (bf16 packs 16 rows)


def _round_up(n: int, m: int) -> int:
    return ((n + m - 1) // m) * m


def _vmem_capacity_bytes() -> int:
    """Physical VMEM of the local TPU; conservative fallback if unknown."""
    try:
        return int(pltpu.get_tpu_info().vmem_capacity_bytes)
    except Exception:
        return 64 << 20  # v7x is the smallest (64 MiB per TensorCore)


class MLPParams(NamedTuple):
    w1: jax.Array     # (D_in_p, H_pad)  bf16
    b1: jax.Array     # (1, H_pad)       f32
    w2: jax.Array     # (H_pad, D_out_p) bf16
    b2: jax.Array     # (1, D_out_p)     f32
    d_in: int         # original input dim
    d_out: int        # original output dim
    nh: int           # number of hidden-dim blocks (H-split reduction steps)
    th: int           # hidden-dim block size (H_pad == nh * th)


def prepare_params(w1, b1, w2, b2, *, force_hsplit=None) -> MLPParams:
    """One-time pad + bf16 cast of the MLP weights to a lane-dense layout."""
    d_in, h = w1.shape
    d_out = w2.shape[1]
    d_in_p = _round_up(d_in, _LANE)
    h_p = _round_up(h, _LANE)
    d_out_p = _round_up(d_out, _LANE)

    # Decide whether the bf16 weights can stay VMEM-resident, or whether
    # fc1/fc2 must be streamed over the hidden dim (H-split reduction grid).
    cap = _vmem_capacity_bytes()
    weight_budget = int(0.45 * cap)
    resident_bytes = (d_in_p * h_p + h_p * d_out_p) * 2 + (h_p + d_out_p) * 4
    if force_hsplit is not None:
        nh = int(force_hsplit)
    elif resident_bytes <= weight_budget:
        nh = 1
    else:
        per_h = 2 * (2 * d_in_p + 2 * d_out_p + 4)   # streamed, double-buffered
        th_fit = max(_LANE, (weight_budget // per_h) // _LANE * _LANE)
        nh = pl.cdiv(h_p, th_fit)
    th = _round_up(pl.cdiv(h_p, nh), _LANE)
    h_pad = nh * th

    w1_p = jnp.zeros((d_in_p, h_pad), jnp.bfloat16).at[:d_in, :h].set(
        w1.astype(jnp.bfloat16))
    b1_p = jnp.zeros((1, h_pad), jnp.float32).at[:, :h].set(
        jnp.reshape(b1, (1, -1)).astype(jnp.float32))
    w2_p = jnp.zeros((h_pad, d_out_p), jnp.bfloat16).at[:h, :d_out].set(
        w2.astype(jnp.bfloat16))
    b2_p = jnp.zeros((1, d_out_p), jnp.float32).at[:, :d_out].set(
        jnp.reshape(b2, (1, -1)).astype(jnp.float32))
    return MLPParams(w1_p, b1_p, w2_p, b2_p, d_in, d_out, nh, th)


def _mlp_kernel_fused(x_ref, w1_ref, b1_ref, w2_ref, b2_ref, o_ref):
    # fc1: (tm, D_in) @ (D_in, H) -> f32 accumulation on the MXU.  The bf16
    # cast of x is VPU work that hides under the matmuls.
    x = x_ref[...].astype(jnp.bfloat16)
    h = jnp.dot(x, w1_ref[...], preferred_element_type=jnp.float32)
    h = jnp.maximum(h + b1_ref[...], 0.0)
    y = jnp.dot(h.astype(jnp.bfloat16), w2_ref[...],
                preferred_element_type=jnp.float32)
    o_ref[...] = (y + b2_ref[...]).astype(o_ref.dtype)


def _mlp_kernel_hsplit(x_ref, w1_ref, b1_ref, w2_ref, b2_ref, o_ref, acc_ref):
    # H-split reduction: grid axis 1 tiles fc1 over hidden columns and fc2
    # over the matching contraction rows; partials accumulate in f32 scratch.
    j = pl.program_id(1)

    @pl.when(j == 0)
    def _():
        acc_ref[...] = jnp.zeros_like(acc_ref)

    x = x_ref[...].astype(jnp.bfloat16)
    h = jnp.dot(x, w1_ref[...], preferred_element_type=jnp.float32)
    h = jnp.maximum(h + b1_ref[...], 0.0)
    acc_ref[...] += jnp.dot(h.astype(jnp.bfloat16), w2_ref[...],
                            preferred_element_type=jnp.float32)

    @pl.when(j == pl.num_programs(1) - 1)
    def _():
        o_ref[...] = (acc_ref[...] + b2_ref[...]).astype(o_ref.dtype)


def mlp_forward(x, params: MLPParams, *, block_b: int = 512):
    """x: (B, d_in) -> (B, d_out); semantics of fc2(relu(fc1(x)))."""
    B, d_in = x.shape
    if d_in != params.d_in:
        raise ValueError(f"x feature dim {d_in} != prepared d_in {params.d_in}")
    d_in_p, h_pad = params.w1.shape
    d_out_p = params.w2.shape[1]
    nh, th = params.nh, params.th
    out_dtype = x.dtype
    cap = _vmem_capacity_bytes()

    # --- batch tiling --------------------------------------------------------
    # Keep (weight slice + double-buffered x/out tiles + f32 intermediates)
    # inside ~70% of physical VMEM (conservative f32 byte counts).
    w_slice_bytes = 2 * ((d_in_p * th + th * d_out_p) * 2 + (th + d_out_p) * 4)
    row_bytes = 2 * d_in_p * 4 + 2 * d_out_p * 4 + th * 6 + d_out_p * 8
    room = int(0.7 * cap) - w_slice_bytes
    if room > 0:
        tm_cap = max(_ROW_ALIGN, (room // row_bytes) // _ROW_ALIGN * _ROW_ALIGN)
        block_b = max(_ROW_ALIGN, min(block_b, tm_cap))

    # Even-sized tiles (<_ROW_ALIGN pad rows per tile); >=2 tiles for larger
    # batches so both v7x TensorCores get work under "parallel" semantics.
    ntiles = pl.cdiv(B, block_b)
    if B >= 256:
        ntiles = max(ntiles, 2)
    tm = _round_up(pl.cdiv(B, ntiles), _ROW_ALIGN)
    b_p = ntiles * tm

    # --- x: pass through untouched when already tile-friendly ----------------
    if b_p == B and d_in == d_in_p:
        x_in = x                      # cast to bf16 inside the kernel
    else:
        x_in = jnp.zeros((b_p, d_in_p), jnp.bfloat16).at[:B, :d_in].set(
            x.astype(jnp.bfloat16))
    x_elt = x_in.dtype.itemsize
    out_elt = jnp.dtype(out_dtype).itemsize

    # --- generation-aware VMEM limit with headroom ---------------------------
    tile_bytes = 2 * tm * d_in_p * x_elt + 2 * tm * d_out_p * out_elt
    interm_bytes = tm * th * 6 + tm * d_out_p * 4
    acc_bytes = tm * d_out_p * 4 if nh > 1 else 0
    need = w_slice_bytes + tile_bytes + interm_bytes + acc_bytes
    vmem_limit = int(min(max(int(1.5 * need), 16 << 20), int(0.78 * cap)))

    cost = pl.CostEstimate(
        flops=2 * b_p * (d_in_p * h_pad + h_pad * d_out_p),
        transcendentals=0,
        bytes_accessed=(x_in.size * x_elt
                        + (params.w1.nbytes + params.w2.nbytes
                           + params.b1.nbytes + params.b2.nbytes)
                        * (1 if nh == 1 else ntiles)
                        + b_p * d_out_p * out_elt),
    )
    out_shape = jax.ShapeDtypeStruct((b_p, d_out_p), out_dtype)

    def call(single_buffer_weights: bool):
        res_kw = ({"pipeline_mode": pl.Buffered(1)}
                  if single_buffer_weights else {})
        if nh == 1:
            grid = (ntiles,)
            in_specs = [
                pl.BlockSpec((tm, d_in_p), lambda i: (i, 0)),            # x: streamed
                pl.BlockSpec((d_in_p, th), lambda i: (0, 0), **res_kw),  # w1: resident
                pl.BlockSpec((1, th), lambda i: (0, 0), **res_kw),       # b1: resident
                pl.BlockSpec((th, d_out_p), lambda i: (0, 0), **res_kw), # w2: resident
                pl.BlockSpec((1, d_out_p), lambda i: (0, 0), **res_kw),  # b2: resident
            ]
            out_specs = pl.BlockSpec((tm, d_out_p), lambda i: (i, 0))
            kernel = _mlp_kernel_fused
            scratch = []
            semantics = ("parallel",)
        else:
            grid = (ntiles, nh)
            in_specs = [
                pl.BlockSpec((tm, d_in_p), lambda i, j: (i, 0)),           # x
                pl.BlockSpec((d_in_p, th), lambda i, j: (0, j)),           # w1 slice
                pl.BlockSpec((1, th), lambda i, j: (0, j)),                # b1 slice
                pl.BlockSpec((th, d_out_p), lambda i, j: (j, 0)),          # w2 slice
                pl.BlockSpec((1, d_out_p), lambda i, j: (0, 0), **res_kw), # b2
            ]
            out_specs = pl.BlockSpec((tm, d_out_p), lambda i, j: (i, 0))
            kernel = _mlp_kernel_hsplit
            scratch = [pltpu.VMEM((tm, d_out_p), jnp.float32)]
            semantics = ("parallel", "arbitrary")
        return pl.pallas_call(
            kernel,
            out_shape=out_shape,
            grid_spec=pltpu.PrefetchScalarGridSpec(
                num_scalar_prefetch=0,
                grid=grid,
                in_specs=in_specs,
                out_specs=out_specs,
                scratch_shapes=scratch,
            ),
            compiler_params=pltpu.CompilerParams(
                dimension_semantics=semantics,
                vmem_limit_bytes=vmem_limit,
            ),
            cost_estimate=cost,
        )(x_in, params.w1, params.b1, params.w2, params.b2)

    try:
        out_p = call(single_buffer_weights=True)
    except Exception:
        # Some jax versions reject Buffered(1); fall back to default buffering.
        out_p = call(single_buffer_weights=False)

    if b_p == B and d_out_p == params.d_out:
        return out_p
    return out_p[:B, :params.d_out]


def init_params(key, input_dim, hidden_dim, output_dim, dtype=jnp.float32):
    """Deterministic init mimicking PyTorch nn.Linear default (uniform +-1/sqrt(fan_in))."""
    k1, k2, k3, k4 = jax.random.split(key, 4)
    bound1 = 1.0 / jnp.sqrt(input_dim)
    bound2 = 1.0 / jnp.sqrt(hidden_dim)
    w1 = jax.random.uniform(k1, (input_dim, hidden_dim), dtype,
                            minval=-bound1, maxval=bound1)
    b1 = jax.random.uniform(k2, (1, hidden_dim), dtype,
                            minval=-bound1, maxval=bound1)
    w2 = jax.random.uniform(k3, (hidden_dim, output_dim), dtype,
                            minval=-bound2, maxval=bound2)
    b2 = jax.random.uniform(k4, (1, output_dim), dtype,
                            minval=-bound2, maxval=bound2)
    return w1, b1, w2, b2


if __name__ == "__main__":
    input_dim = 32
    hidden_dim = 32
    output_dim = 16

    key = jax.random.PRNGKey(0)
    kx, kx2, kp = jax.random.split(key, 3)
    w1, b1, w2, b2 = init_params(kp, input_dim, hidden_dim, output_dim)

    # --- test 1: resident-weight fused path ---------------------------------
    batch = 8
    x = jax.random.normal(kx, (batch, input_dim), jnp.float32)
    params = prepare_params(w1, b1, w2, b2)          # one-time pad + bf16 cast
    out = jax.block_until_ready(mlp_forward(x, params))
    ref = jnp.maximum(x @ w1 + b1, 0.0) @ w2 + b2
    assert out.shape == (batch, output_dim)
    assert jnp.allclose(out, ref, atol=2e-2, rtol=2e-2), (
        float(jnp.max(jnp.abs(out - ref))))

    # --- test 2: H-split reduction path + multi-tile batch grid -------------
    batch2 = 40
    x2 = jax.random.normal(kx2, (batch2, input_dim), jnp.float32)
    params_split = prepare_params(w1, b1, w2, b2, force_hsplit=2)
    out2 = jax.block_until_ready(mlp_forward(x2, params_split, block_b=16))
    ref2 = jnp.maximum(x2 @ w1 + b1, 0.0) @ w2 + b2
    assert out2.shape == (batch2, output_dim)
    assert jnp.allclose(out2, ref2, atol=2e-2, rtol=2e-2), (
        float(jnp.max(jnp.abs(out2 - ref2))))

    print("KERNEL_OK")
</pallas_src>

<mosaic_0001>
module attributes {stable_mosaic.version = 11 : i64} {
  func.func @_mlp_kernel_fused(%arg0: i32, %arg1: memref<16x128xbf16, #tpu.memory_space<vmem>>, %arg2: memref<128x128xbf16, #tpu.memory_space<vmem>>, %arg3: memref<1x128xf32, #tpu.memory_space<vmem>>, %arg4: memref<128x128xbf16, #tpu.memory_space<vmem>>, %arg5: memref<1x128xf32, #tpu.memory_space<vmem>>, %arg6: memref<16x128xf32, #tpu.memory_space<vmem>>) attributes {dimension_semantics = [#tpu.dimension_semantics<parallel>], iteration_bounds = array<i64: 1>, scalar_prefetch = 0 : i64, scratch_operands = 0 : i64, tpu.core_type = #tpu.core_type<tc>, window_params = [{transform_indices = @transform_0, window_bounds = array<i64: 16, 128>}, {pipeline_mode = #tpu.pipeline_mode<synchronous>, transform_indices = @transform_1, window_bounds = array<i64: 128, 128>}, {pipeline_mode = #tpu.pipeline_mode<synchronous>, transform_indices = @transform_2, window_bounds = array<i64: 1, 128>}, {pipeline_mode = #tpu.pipeline_mode<synchronous>, transform_indices = @transform_3, window_bounds = array<i64: 128, 128>}, {pipeline_mode = #tpu.pipeline_mode<synchronous>, transform_indices = @transform_4, window_bounds = array<i64: 1, 128>}, {transform_indices = @transform_5, window_bounds = array<i64: 16, 128>}]} {
    %c0 = arith.constant 0 : index
    %c0_0 = arith.constant 0 : index
    %0 = vector.load %arg1[%c0, %c0_0] : memref<16x128xbf16, #tpu.memory_space<vmem>>, vector<16x128xbf16>
    %c0_1 = arith.constant 0 : index
    %c0_2 = arith.constant 0 : index
    %1 = vector.load %arg2[%c0_1, %c0_2] : memref<128x128xbf16, #tpu.memory_space<vmem>>, vector<128x128xbf16>
    %cst = arith.constant dense<0.000000e+00> : vector<16x128xf32>
    %2 = tpu.matmul %0, %1, %cst {dimension_numbers = #tpu.dot_dimension_numbers<[1], [0], [0], [1], [0, 0, 1, 1], [], []>} : vector<16x128xbf16>, vector<128x128xbf16>, vector<16x128xf32> -> vector<16x128xf32>
    %c0_3 = arith.constant 0 : index
    %c0_4 = arith.constant 0 : index
    %3 = vector.load %arg3[%c0_3, %c0_4] : memref<1x128xf32, #tpu.memory_space<vmem>>, vector<1x128xf32>
    %4 = vector.broadcast %3 : vector<1x128xf32> to vector<16x128xf32>
    %5 = arith.addf %2, %4 : vector<16x128xf32>
    %cst_5 = arith.constant 0.000000e+00 : f32
    %6 = vector.broadcast %cst_5 : f32 to vector<16x128xf32>
    %7 = arith.maximumf %5, %6 : vector<16x128xf32>
    %8 = arith.truncf %7 : vector<16x128xf32> to vector<16x128xbf16>
    %c0_6 = arith.constant 0 : index
    %c0_7 = arith.constant 0 : index
    %9 = vector.load %arg4[%c0_6, %c0_7] : memref<128x128xbf16, #tpu.memory_space<vmem>>, vector<128x128xbf16>
    %cst_8 = arith.constant dense<0.000000e+00> : vector<16x128xf32>
    %10 = tpu.matmul %8, %9, %cst_8 {dimension_numbers = #tpu.dot_dimension_numbers<[1], [0], [0], [1], [0, 0, 1, 1], [], []>} : vector<16x128xbf16>, vector<128x128xbf16>, vector<16x128xf32> -> vector<16x128xf32>
    %c0_9 = arith.constant 0 : index
    %c0_10 = arith.constant 0 : index
    %11 = vector.load %arg5[%c0_9, %c0_10] : memref<1x128xf32, #tpu.memory_space<vmem>>, vector<1x128xf32>
    %12 = vector.broadcast %11 : vector<1x128xf32> to vector<16x128xf32>
    %13 = arith.addf %10, %12 : vector<16x128xf32>
    %c0_11 = arith.constant 0 : index
    %c0_12 = arith.constant 0 : index
    %14 = vector.load %arg6[%c0_11, %c0_12] : memref<16x128xf32, #tpu.memory_space<vmem>>, vector<16x128xf32>
    tpu.vector_store %arg6[%c0_11, %c0_12], %13 {strides = array<i32>} : memref<16x128xf32, #tpu.memory_space<vmem>>, vector<16x128xf32>,
    return
  }
  func.func @transform_0(%arg0: i32) -> (i32, i32) {
    %c0_i32 = arith.constant 0 : i32
    %c0_i32_0 = arith.constant 0 : i32
    return %arg0, %c0_i32 : i32, i32
  }
  func.func @transform_1(%arg0: i32) -> (i32, i32) {
    %c0_i32 = arith.constant 0 : i32
    %c0_i32_0 = arith.constant 0 : i32
    %c0_i32_1 = arith.constant 0 : i32
    return %c0_i32, %c0_i32_0 : i32, i32
  }
  func.func @transform_2(%arg0: i32) -> (i32, i32) {
    %c0_i32 = arith.constant 0 : i32
    %c0_i32_0 = arith.constant 0 : i32
    %c0_i32_1 = arith.constant 0 : i32
    return %c0_i32, %c0_i32_0 : i32, i32
  }
  func.func @transform_3(%arg0: i32) -> (i32, i32) {
    %c0_i32 = arith.constant 0 : i32
    %c0_i32_0 = arith.constant 0 : i32
    %c0_i32_1 = arith.constant 0 : i32
    return %c0_i32, %c0_i32_0 : i32, i32
  }
  func.func @transform_4(%arg0: i32) -> (i32, i32) {
    %c0_i32 = arith.constant 0 : i32
    %c0_i32_0 = arith.constant 0 : i32
    %c0_i32_1 = arith.constant 0 : i32
    return %c0_i32, %c0_i32_0 : i32, i32
  }
  func.func @transform_5(%arg0: i32) -> (i32, i32) {
    %c0_i32 = arith.constant 0 : i32
    %c0_i32_0 = arith.constant 0 : i32
    return %arg0, %c0_i32 : i32, i32
  }
}

module attributes {stable_mosaic.version = 11 : i64} {
  func.func @_mlp_kernel_fused(%arg0: i32, %arg1: memref<16x128xbf16, #tpu.memory_space<vmem>>, %arg2: memref<128x128xbf16, #tpu.memory_space<vmem>>, %arg3: memref<1x128xf32, #tpu.memory_space<vmem>>, %arg4: memref<128x128xbf16, #tpu.memory_space<vmem>>, %arg5: memref<1x128xf32, #tpu.memory_space<vmem>>, %arg6: memref<16x128xf32, #tpu.memory_space<vmem>>) attributes {dimension_semantics = [#tpu.dimension_semantics<parallel>], iteration_bounds = array<i64: 1>, scalar_prefetch = 0 : i64, scratch_operands = 0 : i64, tpu.core_type = #tpu.core_type<tc>, window_params = [{transform_indices = @transform_0, window_bounds = array<i64: 16, 128>}, {pipeline_mode = #tpu.pipeline_mode<synchronous>, transform_indices = @transform_1, window_bounds = array<i64: 128, 128>}, {pipeline_mode = #tpu.pipeline_mode<synchronous>, transform_indices = @transform_2, window_bounds = array<i64: 1, 128>}, {pipeline_mode = #tpu.pipeline_mode<synchronous>, transform_indices = @transform_3, window_bounds = array<i64: 128, 128>}, {pipeline_mode = #tpu.pipeline_mode<synchronous>, transform_indices = @transform_4, window_bounds = array<i64: 1, 128>}, {transform_indices = @transform_5, window_bounds = array<i64: 16, 128>}]} {
    %c0 = arith.constant 0 : index
    %c0_0 = arith.constant 0 : index
    %0 = vector.load %arg1[%c0, %c0_0] : memref<16x128xbf16, #tpu.memory_space<vmem>>, vector<16x128xbf16>
    %c0_1 = arith.constant 0 : index
    %c0_2 = arith.constant 0 : index
    %1 = vector.load %arg2[%c0_1, %c0_2] : memref<128x128xbf16, #tpu.memory_space<vmem>>, vector<128x128xbf16>
    %cst = arith.constant dense<0.000000e+00> : vector<16x128xf32>
    %2 = tpu.matmul %0, %1, %cst {dimension_numbers = #tpu.dot_dimension_numbers<[1], [0], [0], [1], [0, 0, 1, 1], [], []>} : vector<16x128xbf16>, vector<128x128xbf16>, vector<16x128xf32> -> vector<16x128xf32>
    %c0_3 = arith.constant 0 : index
    %c0_4 = arith.constant 0 : index
    %3 = vector.load %arg3[%c0_3, %c0_4] : memref<1x128xf32, #tpu.memory_space<vmem>>, vector<1x128xf32>
    %4 = vector.broadcast %3 : vector<1x128xf32> to vector<16x128xf32>
    %5 = arith.addf %2, %4 : vector<16x128xf32>
    %cst_5 = arith.constant 0.000000e+00 : f32
    %6 = vector.broadcast %cst_5 : f32 to vector<16x128xf32>
    %7 = arith.maximumf %5, %6 : vector<16x128xf32>
    %8 = arith.truncf %7 : vector<16x128xf32> to vector<16x128xbf16>
    %c0_6 = arith.constant 0 : index
    %c0_7 = arith.constant 0 : index
    %9 = vector.load %arg4[%c0_6, %c0_7] : memref<128x128xbf16, #tpu.memory_space<vmem>>, vector<128x128xbf16>
    %cst_8 = arith.constant dense<0.000000e+00> : vector<16x128xf32>
    %10 = tpu.matmul %8, %9, %cst_8 {dimension_numbers = #tpu.dot_dimension_numbers<[1], [0], [0], [1], [0, 0, 1, 1], [], []>} : vector<16x128xbf16>, vector<128x128xbf16>, vector<16x128xf32> -> vector<16x128xf32>
    %c0_9 = arith.constant 0 : index
    %c0_10 = arith.constant 0 : index
    %11 = vector.load %arg5[%c0_9, %c0_10] : memref<1x128xf32, #tpu.memory_space<vmem>>, vector<1x128xf32>
    %12 = vector.broadcast %11 : vector<1x128xf32> to vector<16x128xf32>
    %13 = arith.addf %10, %12 : vector<16x128xf32>
    %c0_11 = arith.constant 0 : index
    %c0_12 = arith.constant 0 : index
    %14 = vector.load %arg6[%c0_11, %c0_12] : memref<16x128xf32, #tpu.memory_space<vmem>>, vector<16x128xf32>
    tpu.vector_store %arg6[%c0_11, %c0_12], %13 {strides = array<i32>} : memref<16x128xf32, #tpu.memory_space<vmem>>, vector<16x128xf32>,
    return
  }
  func.func @transform_0(%arg0: i32) -> (i32, i32) {
    %c0_i32 = arith.constant 0 : i32
    %c0_i32_0 = arith.constant 0 : i32
    return %arg0, %c0_i32 : i32, i32
  }
  func.func @transform_1(%arg0: i32) -> (i32, i32) {
    %c0_i32 = arith.constant 0 : i32
    %c0_i32_0 = arith.constant 0 : i32
    %c0_i32_1 = arith.constant 0 : i32
    return %c0_i32, %c0_i32_0 : i32, i32
  }
  func.func @transform_2(%arg0: i32) -> (i32, i32) {
    %c0_i32 = arith.constant 0 : i32
    %c0_i32_0 = arith.constant 0 : i32
    %c0_i32_1 = arith.constant 0 : i32
    return %c0_i32, %c0_i32_0 : i32, i32
  }
  func.func @transform_3(%arg0: i32) -> (i32, i32) {
    %c0_i32 = arith.constant 0 : i32
    %c0_i32_0 = arith.constant 0 : i32
    %c0_i32_1 = arith.constant 0 : i32
    return %c0_i32, %c0_i32_0 : i32, i32
  }
  func.func @transform_4(%arg0: i32) -> (i32, i32) {
    %c0_i32 = arith.constant 0 : i32
    %c0_i32_0 = arith.constant 0 : i32
    %c0_i32_1 = arith.constant 0 : i32
    return %c0_i32, %c0_i32_0 : i32, i32
  }
  func.func @transform_5(%arg0: i32) -> (i32, i32) {
    %c0_i32 = arith.constant 0 : i32
    %c0_i32_0 = arith.constant 0 : i32
    return %arg0, %c0_i32 : i32, i32
  }
}

</mosaic_0001>

<bundles_post_ra>
// kernel: tpu_custom_call.1
= control target key start
LH: loop header
LB: loop body
LE: loop exit
PB: predicated region body
PF: predicated region fallthrough
CT: control target
= control target key end

     0   :  { %10 = vsyncpa [#allocation3], 0  ;;  %s518_s0 = inlined_call_operand.hbm [shape: bf16[16,128], index: 0, kind: input, shape index: {}]   ;;  %s519_s1 = inlined_call_operand.hbm [shape: bf16[128,128], index: 1, kind: input, shape index: {}]   ;;  %s520_s2 = inlined_call_operand.vmem [shape: f32[1,128], index: 2, kind: input, shape index: {}]   ;;  %s521_s3 = inlined_call_operand.hbm [shape: bf16[128,128], index: 3, kind: input, shape index: {}]   ;;  %s522_s4 = inlined_call_operand.vmem [shape: f32[1,128], index: 4, kind: input, shape index: {}]   ;;  %s523_s5 = inlined_call_operand.hbm [shape: f32[16,128], index: 5, kind: output, shape index: {}]  }
   0x1   :  { %11 = vsyncpa [#allocation6], 0 }
   0x2   :  { %12 = vsyncpa [#allocation4], 0  ;;  %s30_s20 = sshll.u32 %s519_s1, 4  ;;  %s462_s21 = smov [#allocation5]   ;;  %s31_s20 = int_to_ptr.hbm [resolvable:$true] %s30_s20 }
   0x3   :  { %s32_s22 = sshll.u32 %s462_s21, 4  ;;  %s17_s25 = sshll.u32 %s518_s0, 4  ;;  %s33_s22 = int_to_ptr.vmem [resolvable:$true] %s32_s22  ;;  %s18_s25 = int_to_ptr.hbm [resolvable:$true] %s17_s25 }
   0x4   :  { %s463_s26 = smov 64   ;;  %s464_s27 = smov 4  }
   0x5   :  { %38 = dma.hbm_to_vmem [thread:$0]  %s31_s20, 1024, %s33_s22, [#allocation6], %s463_s26, %s463_s26, %s464_s27  }
   0x6   :  { %s465_s28 = smov [#allocation2]   ;;  %s45_s7 = sshll.u32 %s521_s3, 4  ;;  %s46_s7 = int_to_ptr.hbm [resolvable:$true] %s45_s7 }
   0x7   :  { %s19_s29 = sshll.u32 %s465_s28, 4  ;;  %s466_s1 = smov [#allocation7]   ;;  %s20_s29 = int_to_ptr.vmem [resolvable:$true] %s19_s29 }
   0x8   :  { %25 = dma.hbm_to_vmem [thread:$0]  %s18_s25, 128, %s20_s29, [#allocation3], %s463_s26, %s463_s26, %s464_s27  }
   0x9   :  { %s47_s8 = sshll.u32 %s466_s1, 4  ;;  %s48_s8 = int_to_ptr.vmem [resolvable:$true] %s47_s8 }
   0xa   :  { %53 = dma.hbm_to_vmem [thread:$0]  %s46_s7, 1024, %s48_s8, [#allocation6], %s463_s26, %s463_s26, %s464_s27  }
   0xb   :  { %456 = dma.done.wait [#allocation3], 128  }
   0xc   :  { %457 = vsyncadd [#allocation3], 4294967168 }
   0xd   :  { %458 = dma.done.wait [#allocation6], 2048  }
   0xe   :  { %459 = vsyncadd [#allocation6], 4294965248  ;;  %v341_v0 = vld [vmem:[#allocation5 + $0x38] sm:$0xff]  ;;  %v340_v1 = vld [vmem:[#allocation5 + $0x30] sm:$0xff]  ;;  %s467_s11 = smov [#allocation8]   ;;  %s468_s15 = smov 128  }
   0xf   :  { %144 = vmatpush.bf16.msra.mxu0 %v341_v0  ;;  %v349_v2 = vld [vmem:[#allocation7 + $0x38] sm:$0xff]  ;;  %v348_v3 = vld [vmem:[#allocation7 + $0x30] sm:$0xff]  ;;  %v339_v4 = vld [vmem:[#allocation5 + $0x28] sm:$0xff]  ;;  %s249_s12 = sshll.u32 %s467_s11, 4  ;;  %s469_s16 = smov 8   ;;  %s250_s12 = int_to_ptr.vmem [resolvable:$true] %s249_s12 }
  0x10   :  { %229 = vmatpush.bf16.msra.mxu1 %v349_v2  ;;  %v347_v5 = vld [vmem:[#allocation7 + $0x28] sm:$0xff]  ;;  %v338_v6 = vld [vmem:[#allocation5 + $0x20] sm:$0xff]  ;;  %v337_v8 = vld [vmem:[#allocation5 + $0x18] sm:$0xff] }
  0x11   :  { %v346_v7 = vld [vmem:[#allocation7 + $0x20] sm:$0xff]  ;;  %v336_v9 = vld [vmem:[#allocation5 + $0x10] sm:$0xff]  ;;  %v335_v10 = vld [vmem:[#allocation5 + $0x8] sm:$0xff] }
  0x12   :  { %v334_v11 = vld [vmem:[#allocation5] sm:$0xff]  ;;  %v333_v12 = vld [vmem:[#allocation2] sm:$0xff]  ;;  %v344_v14 = vld [vmem:[#allocation7 + $0x10] sm:$0xff] }
  0x13   :  { %145 = vmatpush.bf16.msra.mxu0 %v340_v1  ;;  %v345_v13 = vld [vmem:[#allocation7 + $0x18] sm:$0xff]  ;;  %v343_v15 = vld [vmem:[#allocation7 + $0x8] sm:$0xff]  ;;  %v342_v16 = vld [vmem:[#allocation7] sm:$0xff] }
  0x14   :  { %230 = vmatpush.bf16.msra.mxu1 %v348_v3  ;;  %v358_v18 = vld [vmem:[%s520_s2] ss:$0 sm:$0xff]  ;;  %s251_s2 = sshll.u32 %s523_s5, 4  ;;  %s252_s2 = int_to_ptr.hbm [resolvable:$true] %s251_s2 }
  0x15   :  { %v359_v25 = vld [vmem:[%s522_s4] ss:$0 sm:$0xff] }
  0x17   :  { %146 = vmatpush.bf16.msra.mxu0 %v339_v4 }
  0x18   :  { %231 = vmatpush.bf16.msra.mxu1 %v347_v5 }
  0x1b   :  { %147 = vmatpush.bf16.msra.mxu0 %v338_v6 }
  0x1c   :  { %232 = vmatpush.bf16.msra.mxu1 %v346_v7 }
  0x1f   :  { %148 = vmatpush.bf16.msra.mxu0 %v337_v8 }
  0x20   :  { %233 = vmatpush.bf16.msra.mxu1 %v345_v13 }
  0x23   :  { %149 = vmatpush.bf16.msra.mxu0 %v336_v9 }
  0x24   :  { %234 = vmatpush.bf16.msra.mxu1 %v344_v14 }
  0x27   :  { %150 = vmatpush.bf16.msra.mxu0 %v335_v10 }
  0x28   :  { %235 = vmatpush.bf16.msra.mxu1 %v343_v15 }
  0x2b   :  { %151 = vmatpush.bf16.msra.mxu0 %v334_v11 }
  0x2c   :  { %236 = vmatpush.bf16.msra.mxu1 %v342_v16 }
  0x2e   :  { %152 = vmatmul.bf16.vlgmr.msra.gmra.mxu0 %v333_v12 }
  0xab   :  { %v153_v17 = vpop.f32.mrf.mxu0 }
  0xac   :  { %v154_v19 = vadd.f32 %v358_v18, %v153_v17 }
  0xae   :  { %v158_v22 = vmax.f32 %v154_v19, 0.0 }
  0xb3   :  { %v155_v20 = vpop.f32.mrf.mxu0 }
  0xb4   :  { %v156_v21 = vadd.f32 %v358_v18, %v155_v20 }
  0xb6   :  { %v159_v23 = vmax.f32 %v156_v21, 0.0 }
  0xb8   :  { %v160_v24 = vpack.c.bf16 %v159_v23, %v158_v22 }
  0xba   :  { %237 = vmatmul.bf16.vlgmr.msra.gmra.mxu1 %v160_v24 }
 0x137   :  { %v238_v26 = vpop.f32.mrf.mxu1 }
 0x138   :  { %v239_v27 = vadd.f32 %v359_v25, %v238_v26 }
 0x13a   :  { %243 = vst [vmem:[#allocation8] sm:$0xff] %v239_v27 }
 0x13f   :  { %v240_v28 = vpop.f32.mrf.mxu1 }
 0x140   :  { %v241_v29 = vadd.f32 %v359_v25, %v240_v28 }
 0x142   :  { %244 = vst [vmem:[#allocation8 + $0x8] sm:$0xff] %v241_v29 }
 0x143   :  { %257 = dma.vmem_to_hbm [thread:$0]  %s250_s12, 256, %s252_s2, [#allocation4], %s468_s15, %s468_s15, %s469_s16  }
 0x144   :  { %460 = dma.done.wait [#allocation4], 256  }
 0x145   :  { %461 = vsyncadd [#allocation4], 4294967040 }
 0x146   :  { %262 = vsyncpa [#allocation3], 1 }
 0x147   :  { %263 = vsyncpa [#allocation6], 1 }
 0x148   :  { %264 = vsyncpa [#allocation4], 1 }

// kernel: tpu_custom_call.1
= control target key start
LH: loop header
LB: loop body
LE: loop exit
PB: predicated region body
PF: predicated region fallthrough
CT: control target
= control target key end

     0   :  { %10 = vsyncpa [#allocation3], 0  ;;  %s518_s0 = inlined_call_operand.hbm [shape: bf16[16,128], index: 0, kind: input, shape index: {}]   ;;  %s519_s1 = inlined_call_operand.hbm [shape: bf16[128,128], index: 1, kind: input, shape index: {}]   ;;  %s520_s2 = inlined_call_operand.vmem [shape: f32[1,128], index: 2, kind: input, shape index: {}]   ;;  %s521_s3 = inlined_call_operand.hbm [shape: bf16[128,128], index: 3, kind: input, shape index: {}]   ;;  %s522_s4 = inlined_call_operand.vmem [shape: f32[1,128], index: 4, kind: input, shape index: {}]   ;;  %s523_s5 = inlined_call_operand.hbm [shape: f32[16,128], index: 5, kind: output, shape index: {}]  }
   0x1   :  { %11 = vsyncpa [#allocation6], 0 }
   0x2   :  { %12 = vsyncpa [#allocation4], 0  ;;  %s30_s20 = sshll.u32 %s519_s1, 4  ;;  %s462_s21 = smov [#allocation5]   ;;  %s31_s20 = int_to_ptr.hbm [resolvable:$true] %s30_s20 }
   0x3   :  { %s32_s22 = sshll.u32 %s462_s21, 4  ;;  %s17_s25 = sshll.u32 %s518_s0, 4  ;;  %s33_s22 = int_to_ptr.vmem [resolvable:$true] %s32_s22  ;;  %s18_s25 = int_to_ptr.hbm [resolvable:$true] %s17_s25 }
   0x4   :  { %s463_s26 = smov 64   ;;  %s464_s27 = smov 4  }
   0x5   :  { %38 = dma.hbm_to_vmem [thread:$0]  %s31_s20, 1024, %s33_s22, [#allocation6], %s463_s26, %s463_s26, %s464_s27  }
   0x6   :  { %s465_s28 = smov [#allocation2]   ;;  %s45_s7 = sshll.u32 %s521_s3, 4  ;;  %s46_s7 = int_to_ptr.hbm [resolvable:$true] %s45_s7 }
   0x7   :  { %s19_s29 = sshll.u32 %s465_s28, 4  ;;  %s466_s1 = smov [#allocation7]   ;;  %s20_s29 = int_to_ptr.vmem [resolvable:$true] %s19_s29 }
   0x8   :  { %25 = dma.hbm_to_vmem [thread:$0]  %s18_s25, 128, %s20_s29, [#allocation3], %s463_s26, %s463_s26, %s464_s27  }
   0x9   :  { %s47_s8 = sshll.u32 %s466_s1, 4  ;;  %s48_s8 = int_to_ptr.vmem [resolvable:$true] %s47_s8 }
   0xa   :  { %53 = dma.hbm_to_vmem [thread:$0]  %s46_s7, 1024, %s48_s8, [#allocation6], %s463_s26, %s463_s26, %s464_s27  }
   0xb   :  { %456 = dma.done.wait [#allocation3], 128  }
   0xc   :  { %457 = vsyncadd [#allocation3], 4294967168 }
   0xd   :  { %458 = dma.done.wait [#allocation6], 2048  }
   0xe   :  { %459 = vsyncadd [#allocation6], 4294965248  ;;  %v341_v0 = vld [vmem:[#allocation5 + $0x38] sm:$0xff]  ;;  %v340_v1 = vld [vmem:[#allocation5 + $0x30] sm:$0xff]  ;;  %s467_s11 = smov [#allocation8]   ;;  %s468_s15 = smov 128  }
   0xf   :  { %144 = vmatpush.bf16.msra.mxu0 %v341_v0  ;;  %v349_v2 = vld [vmem:[#allocation7 + $0x38] sm:$0xff]  ;;  %v348_v3 = vld [vmem:[#allocation7 + $0x30] sm:$0xff]  ;;  %v339_v4 = vld [vmem:[#allocation5 + $0x28] sm:$0xff]  ;;  %s249_s12 = sshll.u32 %s467_s11, 4  ;;  %s469_s16 = smov 8   ;;  %s250_s12 = int_to_ptr.vmem [resolvable:$true] %s249_s12 }
  0x10   :  { %229 = vmatpush.bf16.msra.mxu1 %v349_v2  ;;  %v347_v5 = vld [vmem:[#allocation7 + $0x28] sm:$0xff]  ;;  %v338_v6 = vld [vmem:[#allocation5 + $0x20] sm:$0xff]  ;;  %v337_v8 = vld [vmem:[#allocation5 + $0x18] sm:$0xff] }
  0x11   :  { %v346_v7 = vld [vmem:[#allocation7 + $0x20] sm:$0xff]  ;;  %v336_v9 = vld [vmem:[#allocation5 + $0x10] sm:$0xff]  ;;  %v335_v10 = vld [vmem:[#allocation5 + $0x8] sm:$0xff] }
  0x12   :  { %v334_v11 = vld [vmem:[#allocation5] sm:$0xff]  ;;  %v333_v12 = vld [vmem:[#allocation2] sm:$0xff]  ;;  %v344_v14 = vld [vmem:[#allocation7 + $0x10] sm:$0xff] }
  0x13   :  { %145 = vmatpush.bf16.msra.mxu0 %v340_v1  ;;  %v345_v13 = vld [vmem:[#allocation7 + $0x18] sm:$0xff]  ;;  %v343_v15 = vld [vmem:[#allocation7 + $0x8] sm:$0xff]  ;;  %v342_v16 = vld [vmem:[#allocation7] sm:$0xff] }
  0x14   :  { %230 = vmatpush.bf16.msra.mxu1 %v348_v3  ;;  %v358_v18 = vld [vmem:[%s520_s2] ss:$0 sm:$0xff]  ;;  %s251_s2 = sshll.u32 %s523_s5, 4  ;;  %s252_s2 = int_to_ptr.hbm [resolvable:$true] %s251_s2 }
  0x15   :  { %v359_v25 = vld [vmem:[%s522_s4] ss:$0 sm:$0xff] }
  0x17   :  { %146 = vmatpush.bf16.msra.mxu0 %v339_v4 }
  0x18   :  { %231 = vmatpush.bf16.msra.mxu1 %v347_v5 }
  0x1b   :  { %147 = vmatpush.bf16.msra.mxu0 %v338_v6 }
  0x1c   :  { %232 = vmatpush.bf16.msra.mxu1 %v346_v7 }
  0x1f   :  { %148 = vmatpush.bf16.msra.mxu0 %v337_v8 }
  0x20   :  { %233 = vmatpush.bf16.msra.mxu1 %v345_v13 }
  0x23   :  { %149 = vmatpush.bf16.msra.mxu0 %v336_v9 }
  0x24   :  { %234 = vmatpush.bf16.msra.mxu1 %v344_v14 }
  0x27   :  { %150 = vmatpush.bf16.msra.mxu0 %v335_v10 }
  0x28   :  { %235 = vmatpush.bf16.msra.mxu1 %v343_v15 }
  0x2b   :  { %151 = vmatpush.bf16.msra.mxu0 %v334_v11 }
  0x2c   :  { %236 = vmatpush.bf16.msra.mxu1 %v342_v16 }
  0x2e   :  { %152 = vmatmul.bf16.vlgmr.msra.gmra.mxu0 %v333_v12 }
  0xab   :  { %v153_v17 = vpop.f32.mrf.mxu0 }
  0xac   :  { %v154_v19 = vadd.f32 %v358_v18, %v153_v17 }
  0xae   :  { %v158_v22 = vmax.f32 %v154_v19, 0.0 }
  0xb3   :  { %v155_v20 = vpop.f32.mrf.mxu0 }
  0xb4   :  { %v156_v21 = vadd.f32 %v358_v18, %v155_v20 }
  0xb6   :  { %v159_v23 = vmax.f32 %v156_v21, 0.0 }
  0xb8   :  { %v160_v24 = vpack.c.bf16 %v159_v23, %v158_v22 }
  0xba   :  { %237 = vmatmul.bf16.vlgmr.msra.gmra.mxu1 %v160_v24 }
 0x137   :  { %v238_v26 = vpop.f32.mrf.mxu1 }
 0x138   :  { %v239_v27 = vadd.f32 %v359_v25, %v238_v26 }
 0x13a   :  { %243 = vst [vmem:[#allocation8] sm:$0xff] %v239_v27 }
 0x13f   :  { %v240_v28 = vpop.f32.mrf.mxu1 }
 0x140   :  { %v241_v29 = vadd.f32 %v359_v25, %v240_v28 }
 0x142   :  { %244 = vst [vmem:[#allocation8 + $0x8] sm:$0xff] %v241_v29 }
 0x143   :  { %257 = dma.vmem_to_hbm [thread:$0]  %s250_s12, 256, %s252_s2, [#allocation4], %s468_s15, %s468_s15, %s469_s16  }
 0x144   :  { %460 = dma.done.wait [#allocation4], 256  }
 0x145   :  { %461 = vsyncadd [#allocation4], 4294967040 }
 0x146   :  { %262 = vsyncpa [#allocation3], 1 }
 0x147   :  { %263 = vsyncpa [#allocation6], 1 }
 0x148   :  { %264 = vsyncpa [#allocation4], 1 }

</bundles_post_ra>
